<compile_context>
chip_gen: v7x
topology: tpu7x:2x2x1
jax: 0.10.0
libtpu: 0.0.40
codegen_flags: <defaults>
</compile_context>

<pallas_src>
import functools

import jax
import jax.numpy as jnp
from jax.experimental import pallas as pl
from jax.experimental.pallas import tpu as pltpu


def _round_up(n, m):
    return ((n + m - 1) // m) * m


def _rnn_recurrence_kernel(alpha, unroll, xproj_ref, h0_ref, wrec_ref,
                           hid_ref, h_sc):
    """One grid step == TT RNN time steps. h carried in VMEM scratch.

    xproj_ref: (TT, Bp, Hp)  precomputed x(t) @ W_in, time-major
    h0_ref:    (Bp, Hp)      initial hidden state (resident)
    wrec_ref:  (Hp, Hp)      recurrent weights (resident)
    hid_ref:   (TT, Bp, Hp)  per-step hidden states (output)
    h_sc:      (Bp, Hp)      carried hidden state (VMEM scratch)
    """
    @pl.when(pl.program_id(0) == 0)
    def _():
        h_sc[...] = h0_ref[...]

    num_steps = hid_ref.shape[0]
    w_rec = wrec_ref[...]                       # hoist weight load out of loop

    def step(s, carry):
        h_prev = h_sc[...]                                          # (Bp, Hp)
        pre = jnp.dot(h_prev, w_rec,
                      preferred_element_type=jnp.float32) + xproj_ref[s]
        h_new = (1.0 - alpha) * h_prev + alpha * jnp.tanh(pre)
        h_sc[...] = h_new
        hid_ref[s] = h_new          # lane-dense (Bp, Hp) store into the block
        return carry

    jax.lax.fori_loop(0, num_steps, step, 0, unroll=unroll)


def custom_rnn_forward(x_bti, h0, W_in, W_rec, W_out, alpha=0.1,
                       time_block=256):
    """x_bti: (B, T, I), h0: (B, H).

    Returns (outputs (B, T, O), hidden_states (T+1, B, H)).
    """
    B, T, I = x_bti.shape
    H = W_rec.shape[0]
    O = W_out.shape[1]

    Bp = _round_up(max(B, 1), 8)
    Hp = _round_up(max(H, 1), 128)
    TT = min(T, time_block)
    Tp = _round_up(T, TT)

    x_f32 = x_bti.astype(jnp.float32)
    W_in_f32 = W_in.astype(jnp.float32)
    W_out_f32 = W_out.astype(jnp.float32)
    h0_f32 = h0.astype(jnp.float32)

    # Hoisted input projection: one big GEMM over all (T*B) rows, emitted
    # time-major so each recurrence step reads a lane-dense (Bp, Hp) tile.
    xproj = jnp.einsum('bti,ih->tbh', x_f32, W_in_f32)        # (T, B, H)
    xproj_p = jnp.zeros((Tp, Bp, Hp), jnp.float32).at[:T, :B, :H].set(xproj)

    h0_p = jnp.zeros((Bp, Hp), jnp.float32).at[:B, :H].set(h0_f32)
    wrec_p = jnp.zeros((Hp, Hp), jnp.float32).at[:H, :H].set(
        W_rec.astype(jnp.float32))
    # TODO(synk): for large H, cast weights to bf16 (f32 accumulation) to halve
    # VMEM residency; kept f32 here to match the f32 reference bit-closely.

    unroll = TT if TT <= 8 else 8
    kernel = functools.partial(_rnn_recurrence_kernel, float(alpha), unroll)

    hid_p = pl.pallas_call(
        kernel,
        out_shape=jax.ShapeDtypeStruct((Tp, Bp, Hp), jnp.float32),
        grid_spec=pltpu.PrefetchScalarGridSpec(
            num_scalar_prefetch=0,
            grid=(Tp // TT,),
            in_specs=[
                pl.BlockSpec((TT, Bp, Hp), lambda tt: (tt, 0, 0)),  # x @ W_in
                pl.BlockSpec((Bp, Hp), lambda tt: (0, 0)),          # h0
                pl.BlockSpec((Hp, Hp), lambda tt: (0, 0)),          # W_rec
            ],
            out_specs=pl.BlockSpec((TT, Bp, Hp), lambda tt: (tt, 0, 0)),
            scratch_shapes=[pltpu.VMEM((Bp, Hp), jnp.float32)],     # carried h
        ),
        compiler_params=pltpu.CompilerParams(
            dimension_semantics=("arbitrary",),   # sequential recurrence over T
        ),
    )(xproj_p, h0_p, wrec_p)

    hid_tbh = hid_p[:T, :B, :H]                                   # (T, B, H)

    # Hoisted readout: one big GEMM over all (T*B) rows, batch-major output.
    outputs = jnp.einsum('tbh,ho->bto', hid_tbh, W_out_f32)       # (B, T, O)

    hidden_states = jnp.concatenate([h0_f32[None], hid_tbh], axis=0)  # (T+1,B,H)
    return outputs, hidden_states


def _xavier_uniform(key, shape):
    fan_in, fan_out = shape
    limit = jnp.sqrt(6.0 / (fan_in + fan_out))
    return jax.random.uniform(key, shape, jnp.float32, -limit, limit)


def _reference_forward(x_bti, h0, W_in, W_rec, W_out, alpha=0.1):
    """Pure-JAX reference (lax.scan) mirroring the PyTorch loop."""
    def step(h, x_t):
        h_new = (1.0 - alpha) * h + alpha * jnp.tanh(h @ W_rec + x_t @ W_in)
        return h_new, (h_new @ W_out, h_new)
    x_tbi = jnp.transpose(x_bti, (1, 0, 2))
    _, (ys, hs) = jax.lax.scan(step, h0, x_tbi)
    return jnp.transpose(ys, (1, 0, 2)), jnp.concatenate([h0[None], hs], 0)


if __name__ == "__main__":
    # Small deterministic example: batch=2, seq=8, input=4, hidden=32, output=4
    B, T, I, H, O = 2, 8, 4, 32, 4
    alpha = 0.1

    key = jax.random.PRNGKey(0)
    k_in, k_rec, k_out, k_x, k_h = jax.random.split(key, 5)

    W_in = _xavier_uniform(k_in, (I, H))
    W_rec = _xavier_uniform(k_rec, (H, H)) * (1.0 - jnp.eye(H, dtype=jnp.float32))
    W_out = _xavier_uniform(k_out, (H, O))

    x = jax.random.normal(k_x, (B, T, I), jnp.float32)
    h0 = jax.random.normal(k_h, (B, H), jnp.float32)

    outputs, hidden_states = custom_rnn_forward(x, h0, W_in, W_rec, W_out, alpha)
    outputs = jax.block_until_ready(outputs)
    hidden_states = jax.block_until_ready(hidden_states)

    ref_out, ref_hid = _reference_forward(x, h0, W_in, W_rec, W_out, alpha)
    assert outputs.shape == (B, T, O)
    assert hidden_states.shape == (T + 1, B, H)
    assert jnp.allclose(outputs, ref_out, atol=1e-4, rtol=1e-4)
    assert jnp.allclose(hidden_states, ref_hid, atol=1e-4, rtol=1e-4)

    print("KERNEL_OK")
</pallas_src>

<mosaic_0001>
module attributes {stable_mosaic.version = 11 : i64} {
  func.func @_rnn_recurrence_kernel(%arg0: i32, %arg1: memref<8x8x128xf32, #tpu.memory_space<vmem>>, %arg2: memref<8x128xf32, #tpu.memory_space<vmem>>, %arg3: memref<128x128xf32, #tpu.memory_space<vmem>>, %arg4: memref<8x8x128xf32, #tpu.memory_space<vmem>>, %arg5: memref<8x128xf32, #tpu.memory_space<vmem>>) attributes {dimension_semantics = [#tpu.dimension_semantics<arbitrary>], iteration_bounds = array<i64: 1>, scalar_prefetch = 0 : i64, scratch_operands = 1 : i64, tpu.core_type = #tpu.core_type<tc>, window_params = [{transform_indices = @transform_0, window_bounds = array<i64: 8, 8, 128>}, {pipeline_mode = #tpu.pipeline_mode<synchronous>, transform_indices = @transform_1, window_bounds = array<i64: 8, 128>}, {pipeline_mode = #tpu.pipeline_mode<synchronous>, transform_indices = @transform_2, window_bounds = array<i64: 128, 128>}, {transform_indices = @transform_3, window_bounds = array<i64: 8, 8, 128>}]} {
    %c0_i32 = arith.constant 0 : i32
    %0 = arith.cmpi eq, %arg0, %c0_i32 : i32
    %1 = arith.extui %0 : i1 to i32
    %c0_i32_0 = arith.constant 0 : i32
    %2 = arith.cmpi ne, %1, %c0_i32_0 : i32
    scf.if %2 {
      %c0_90 = arith.constant 0 : index
      %c0_91 = arith.constant 0 : index
      %140 = vector.load %arg2[%c0_90, %c0_91] : memref<8x128xf32, #tpu.memory_space<vmem>>, vector<8x128xf32>
      %c0_92 = arith.constant 0 : index
      %c0_93 = arith.constant 0 : index
      %141 = vector.load %arg5[%c0_92, %c0_93] : memref<8x128xf32, #tpu.memory_space<vmem>>, vector<8x128xf32>
      tpu.vector_store %arg5[%c0_92, %c0_93], %140 {strides = array<i32>} : memref<8x128xf32, #tpu.memory_space<vmem>>, vector<8x128xf32>,
    } else {
    }
    %c0 = arith.constant 0 : index
    %c0_1 = arith.constant 0 : index
    %3 = vector.load %arg3[%c0, %c0_1] : memref<128x128xf32, #tpu.memory_space<vmem>>, vector<128x128xf32>
    %c0_i32_2 = arith.constant 0 : i32
    %c0_3 = arith.constant 0 : index
    %c0_4 = arith.constant 0 : index
    %4 = vector.load %arg5[%c0_3, %c0_4] : memref<8x128xf32, #tpu.memory_space<vmem>>, vector<8x128xf32>
    %cst = arith.constant dense<0.000000e+00> : vector<8x128xf32>
    %5 = tpu.matmul %4, %3, %cst {dimension_numbers = #tpu.dot_dimension_numbers<[1], [0], [0], [1], [0, 0, 1, 1], [], []>} : vector<8x128xf32>, vector<128x128xf32>, vector<8x128xf32> -> vector<8x128xf32>
    %6 = arith.index_cast %c0_i32_2 : i32 to index
    %c0_5 = arith.constant 0 : index
    %c0_6 = arith.constant 0 : index
    %7 = vector.load %arg1[%6, %c0_5, %c0_6] : memref<8x8x128xf32, #tpu.memory_space<vmem>>, vector<1x8x128xf32>
    %8 = vector.shape_cast %7 : vector<1x8x128xf32> to vector<8x128xf32>
    %9 = arith.addf %5, %8 : vector<8x128xf32>
    %cst_7 = arith.constant 0.899999976 : f32
    %10 = vector.broadcast %cst_7 : f32 to vector<8x128xf32>
    %11 = arith.mulf %10, %4 : vector<8x128xf32>
    %12 = math.tanh %9 : vector<8x128xf32>
    %cst_8 = arith.constant 1.000000e-01 : f32
    %13 = vector.broadcast %cst_8 : f32 to vector<8x128xf32>
    %14 = arith.mulf %13, %12 : vector<8x128xf32>
    %15 = arith.addf %11, %14 : vector<8x128xf32>
    %c0_9 = arith.constant 0 : index
    %c0_10 = arith.constant 0 : index
    %16 = vector.load %arg5[%c0_9, %c0_10] : memref<8x128xf32, #tpu.memory_space<vmem>>, vector<8x128xf32>
    tpu.vector_store %arg5[%c0_9, %c0_10], %15 {strides = array<i32>} : memref<8x128xf32, #tpu.memory_space<vmem>>, vector<8x128xf32>,
    %17 = arith.index_cast %c0_i32_2 : i32 to index
    %c0_11 = arith.constant 0 : index
    %c0_12 = arith.constant 0 : index
    %18 = vector.load %arg4[%17, %c0_11, %c0_12] : memref<8x8x128xf32, #tpu.memory_space<vmem>>, vector<1x8x128xf32>
    %19 = vector.shape_cast %18 : vector<1x8x128xf32> to vector<8x128xf32>
    %20 = vector.shape_cast %15 : vector<8x128xf32> to vector<1x8x128xf32>
    tpu.vector_store %arg4[%17, %c0_11, %c0_12], %20 {strides = array<i32>} : memref<8x8x128xf32, #tpu.memory_space<vmem>>, vector<1x8x128xf32>,
    %c1_i32 = arith.constant 1 : i32
    %c0_13 = arith.constant 0 : index
    %c0_14 = arith.constant 0 : index
    %21 = vector.load %arg5[%c0_13, %c0_14] : memref<8x128xf32, #tpu.memory_space<vmem>>, vector<8x128xf32>
    %cst_15 = arith.constant dense<0.000000e+00> : vector<8x128xf32>
    %22 = tpu.matmul %21, %3, %cst_15 {dimension_numbers = #tpu.dot_dimension_numbers<[1], [0], [0], [1], [0, 0, 1, 1], [], []>} : vector<8x128xf32>, vector<128x128xf32>, vector<8x128xf32> -> vector<8x128xf32>
    %23 = arith.index_cast %c1_i32 : i32 to index
    %c0_16 = arith.constant 0 : index
    %c0_17 = arith.constant 0 : index
    %24 = vector.load %arg1[%23, %c0_16, %c0_17] : memref<8x8x128xf32, #tpu.memory_space<vmem>>, vector<1x8x128xf32>
    %25 = vector.shape_cast %24 : vector<1x8x128xf32> to vector<8x128xf32>
    %26 = arith.addf %22, %25 : vector<8x128xf32>
    %cst_18 = arith.constant 0.899999976 : f32
    %27 = vector.broadcast %cst_18 : f32 to vector<8x128xf32>
    %28 = arith.mulf %27, %21 : vector<8x128xf32>
    %29 = math.tanh %26 : vector<8x128xf32>
    %cst_19 = arith.constant 1.000000e-01 : f32
    %30 = vector.broadcast %cst_19 : f32 to vector<8x128xf32>
    %31 = arith.mulf %30, %29 : vector<8x128xf32>
    %32 = arith.addf %28, %31 : vector<8x128xf32>
    %c0_20 = arith.constant 0 : index
    %c0_21 = arith.constant 0 : index
    %33 = vector.load %arg5[%c0_20, %c0_21] : memref<8x128xf32, #tpu.memory_space<vmem>>, vector<8x128xf32>
    tpu.vector_store %arg5[%c0_20, %c0_21], %32 {strides = array<i32>} : memref<8x128xf32, #tpu.memory_space<vmem>>, vector<8x128xf32>,
    %34 = arith.index_cast %c1_i32 : i32 to index
    %c0_22 = arith.constant 0 : index
    %c0_23 = arith.constant 0 : index
    %35 = vector.load %arg4[%34, %c0_22, %c0_23] : memref<8x8x128xf32, #tpu.memory_space<vmem>>, vector<1x8x128xf32>
    %36 = vector.shape_cast %35 : vector<1x8x128xf32> to vector<8x128xf32>
    %37 = vector.shape_cast %32 : vector<8x128xf32> to vector<1x8x128xf32>
    tpu.vector_store %arg4[%34, %c0_22, %c0_23], %37 {strides = array<i32>} : memref<8x8x128xf32, #tpu.memory_space<vmem>>, vector<1x8x128xf32>,
    %c2_i32 = arith.constant 2 : i32
    %c0_24 = arith.constant 0 : index
    %c0_25 = arith.constant 0 : index
    %38 = vector.load %arg5[%c0_24, %c0_25] : memref<8x128xf32, #tpu.memory_space<vmem>>, vector<8x128xf32>
    %cst_26 = arith.constant dense<0.000000e+00> : vector<8x128xf32>
    %39 = tpu.matmul %38, %3, %cst_26 {dimension_numbers = #tpu.dot_dimension_numbers<[1], [0], [0], [1], [0, 0, 1, 1], [], []>} : vector<8x128xf32>, vector<128x128xf32>, vector<8x128xf32> -> vector<8x128xf32>
    %40 = arith.index_cast %c2_i32 : i32 to index
    %c0_27 = arith.constant 0 : index
    %c0_28 = arith.constant 0 : index
    %41 = vector.load %arg1[%40, %c0_27, %c0_28] : memref<8x8x128xf32, #tpu.memory_space<vmem>>, vector<1x8x128xf32>
    %42 = vector.shape_cast %41 : vector<1x8x128xf32> to vector<8x128xf32>
    %43 = arith.addf %39, %42 : vector<8x128xf32>
    %cst_29 = arith.constant 0.899999976 : f32
    %44 = vector.broadcast %cst_29 : f32 to vector<8x128xf32>
    %45 = arith.mulf %44, %38 : vector<8x128xf32>
    %46 = math.tanh %43 : vector<8x128xf32>
    %cst_30 = arith.constant 1.000000e-01 : f32
    %47 = vector.broadcast %cst_30 : f32 to vector<8x128xf32>
    %48 = arith.mulf %47, %46 : vector<8x128xf32>
    %49 = arith.addf %45, %48 : vector<8x128xf32>
    %c0_31 = arith.constant 0 : index
    %c0_32 = arith.constant 0 : index
    %50 = vector.load %arg5[%c0_31, %c0_32] : memref<8x128xf32, #tpu.memory_space<vmem>>, vector<8x128xf32>
    tpu.vector_store %arg5[%c0_31, %c0_32], %49 {strides = array<i32>} : memref<8x128xf32, #tpu.memory_space<vmem>>, vector<8x128xf32>,
    %51 = arith.index_cast %c2_i32 : i32 to index
    %c0_33 = arith.constant 0 : index
    %c0_34 = arith.constant 0 : index
    %52 = vector.load %arg4[%51, %c0_33, %c0_34] : memref<8x8x128xf32, #tpu.memory_space<vmem>>, vector<1x8x128xf32>
    %53 = vector.shape_cast %52 : vector<1x8x128xf32> to vector<8x128xf32>
    %54 = vector.shape_cast %49 : vector<8x128xf32> to vector<1x8x128xf32>
    tpu.vector_store %arg4[%51, %c0_33, %c0_34], %54 {strides = array<i32>} : memref<8x8x128xf32, #tpu.memory_space<vmem>>, vector<1x8x128xf32>,
    %c3_i32 = arith.constant 3 : i32
    %c0_35 = arith.constant 0 : index
    %c0_36 = arith.constant 0 : index
    %55 = vector.load %arg5[%c0_35, %c0_36] : memref<8x128xf32, #tpu.memory_space<vmem>>, vector<8x128xf32>
    %cst_37 = arith.constant dense<0.000000e+00> : vector<8x128xf32>
    %56 = tpu.matmul %55, %3, %cst_37 {dimension_numbers = #tpu.dot_dimension_numbers<[1], [0], [0], [1], [0, 0, 1, 1], [], []>} : vector<8x128xf32>, vector<128x128xf32>, vector<8x128xf32> -> vector<8x128xf32>
    %57 = arith.index_cast %c3_i32 : i32 to index
    %c0_38 = arith.constant 0 : index
    %c0_39 = arith.constant 0 : index
    %58 = vector.load %arg1[%57, %c0_38, %c0_39] : memref<8x8x128xf32, #tpu.memory_space<vmem>>, vector<1x8x128xf32>
    %59 = vector.shape_cast %58 : vector<1x8x128xf32> to vector<8x128xf32>
    %60 = arith.addf %56, %59 : vector<8x128xf32>
    %cst_40 = arith.constant 0.899999976 : f32
    %61 = vector.broadcast %cst_40 : f32 to vector<8x128xf32>
    %62 = arith.mulf %61, %55 : vector<8x128xf32>
    %63 = math.tanh %60 : vector<8x128xf32>
    %cst_41 = arith.constant 1.000000e-01 : f32
    %64 = vector.broadcast %cst_41 : f32 to vector<8x128xf32>
    %65 = arith.mulf %64, %63 : vector<8x128xf32>
    %66 = arith.addf %62, %65 : vector<8x128xf32>
    %c0_42 = arith.constant 0 : index
    %c0_43 = arith.constant 0 : index
    %67 = vector.load %arg5[%c0_42, %c0_43] : memref<8x128xf32, #tpu.memory_space<vmem>>, vector<8x128xf32>
    tpu.vector_store %arg5[%c0_42, %c0_43], %66 {strides = array<i32>} : memref<8x128xf32, #tpu.memory_space<vmem>>, vector<8x128xf32>,
    %68 = arith.index_cast %c3_i32 : i32 to index
    %c0_44 = arith.constant 0 : index
    %c0_45 = arith.constant 0 : index
    %69 = vector.load %arg4[%68, %c0_44, %c0_45] : memref<8x8x128xf32, #tpu.memory_space<vmem>>, vector<1x8x128xf32>
    %70 = vector.shape_cast %69 : vector<1x8x128xf32> to vector<8x128xf32>
    %71 = vector.shape_cast %66 : vector<8x128xf32> to vector<1x8x128xf32>
    tpu.vector_store %arg4[%68, %c0_44, %c0_45], %71 {strides = array<i32>} : memref<8x8x128xf32, #tpu.memory_space<vmem>>, vector<1x8x128xf32>,
    %c4_i32 = arith.constant 4 : i32
    %c0_46 = arith.constant 0 : index
    %c0_47 = arith.constant 0 : index
    %72 = vector.load %arg5[%c0_46, %c0_47] : memref<8x128xf32, #tpu.memory_space<vmem>>, vector<8x128xf32>
    %cst_48 = arith.constant dense<0.000000e+00> : vector<8x128xf32>
    %73 = tpu.matmul %72, %3, %cst_48 {dimension_numbers = #tpu.dot_dimension_numbers<[1], [0], [0], [1], [0, 0, 1, 1], [], []>} : vector<8x128xf32>, vector<128x128xf32>, vector<8x128xf32> -> vector<8x128xf32>
    %74 = arith.index_cast %c4_i32 : i32 to index
    %c0_49 = arith.constant 0 : index
    %c0_50 = arith.constant 0 : index
    %75 = vector.load %arg1[%74, %c0_49, %c0_50] : memref<8x8x128xf32, #tpu.memory_space<vmem>>, vector<1x8x128xf32>
    %76 = vector.shape_cast %75 : vector<1x8x128xf32> to vector<8x128xf32>
    %77 = arith.addf %73, %76 : vector<8x128xf32>
    %cst_51 = arith.constant 0.899999976 : f32
    %78 = vector.broadcast %cst_51 : f32 to vector<8x128xf32>
    %79 = arith.mulf %78, %72 : vector<8x128xf32>
    %80 = math.tanh %77 : vector<8x128xf32>
    %cst_52 = arith.constant 1.000000e-01 : f32
    %81 = vector.broadcast %cst_52 : f32 to vector<8x128xf32>
    %82 = arith.mulf %81, %80 : vector<8x128xf32>
    %83 = arith.addf %79, %82 : vector<8x128xf32>
    %c0_53 = arith.constant 0 : index
    %c0_54 = arith.constant 0 : index
    %84 = vector.load %arg5[%c0_53, %c0_54] : memref<8x128xf32, #tpu.memory_space<vmem>>, vector<8x128xf32>
    tpu.vector_store %arg5[%c0_53, %c0_54], %83 {strides = array<i32>} : memref<8x128xf32, #tpu.memory_space<vmem>>, vector<8x128xf32>,
    %85 = arith.index_cast %c4_i32 : i32 to index
    %c0_55 = arith.constant 0 : index
    %c0_56 = arith.constant 0 : index
    %86 = vector.load %arg4[%85, %c0_55, %c0_56] : memref<8x8x128xf32, #tpu.memory_space<vmem>>, vector<1x8x128xf32>
    %87 = vector.shape_cast %86 : vector<1x8x128xf32> to vector<8x128xf32>
    %88 = vector.shape_cast %83 : vector<8x128xf32> to vector<1x8x128xf32>
    tpu.vector_store %arg4[%85, %c0_55, %c0_56], %88 {strides = array<i32>} : memref<8x8x128xf32, #tpu.memory_space<vmem>>, vector<1x8x128xf32>,
    %c5_i32 = arith.constant 5 : i32
    %c0_57 = arith.constant 0 : index
    %c0_58 = arith.constant 0 : index
    %89 = vector.load %arg5[%c0_57, %c0_58] : memref<8x128xf32, #tpu.memory_space<vmem>>, vector<8x128xf32>
    %cst_59 = arith.constant dense<0.000000e+00> : vector<8x128xf32>
    %90 = tpu.matmul %89, %3, %cst_59 {dimension_numbers = #tpu.dot_dimension_numbers<[1], [0], [0], [1], [0, 0, 1, 1], [], []>} : vector<8x128xf32>, vector<128x128xf32>, vector<8x128xf32> -> vector<8x128xf32>
    %91 = arith.index_cast %c5_i32 : i32 to index
    %c0_60 = arith.constant 0 : index
    %c0_61 = arith.constant 0 : index
    %92 = vector.load %arg1[%91, %c0_60, %c0_61] : memref<8x8x128xf32, #tpu.memory_space<vmem>>, vector<1x8x128xf32>
    %93 = vector.shape_cast %92 : vector<1x8x128xf32> to vector<8x128xf32>
    %94 = arith.addf %90, %93 : vector<8x128xf32>
    %cst_62 = arith.constant 0.899999976 : f32
    %95 = vector.broadcast %cst_62 : f32 to vector<8x128xf32>
    %96 = arith.mulf %95, %89 : vector<8x128xf32>
    %97 = math.tanh %94 : vector<8x128xf32>
    %cst_63 = arith.constant 1.000000e-01 : f32
    %98 = vector.broadcast %cst_63 : f32 to vector<8x128xf32>
    %99 = arith.mulf %98, %97 : vector<8x128xf32>
    %100 = arith.addf %96, %99 : vector<8x128xf32>
    %c0_64 = arith.constant 0 : index
    %c0_65 = arith.constant 0 : index
    %101 = vector.load %arg5[%c0_64, %c0_65] : memref<8x128xf32, #tpu.memory_space<vmem>>, vector<8x128xf32>
    tpu.vector_store %arg5[%c0_64, %c0_65], %100 {strides = array<i32>} : memref<8x128xf32, #tpu.memory_space<vmem>>, vector<8x128xf32>,
    %102 = arith.index_cast %c5_i32 : i32 to index
    %c0_66 = arith.constant 0 : index
    %c0_67 = arith.constant 0 : index
    %103 = vector.load %arg4[%102, %c0_66, %c0_67] : memref<8x8x128xf32, #tpu.memory_space<vmem>>, vector<1x8x128xf32>
    %104 = vector.shape_cast %103 : vector<1x8x128xf32> to vector<8x128xf32>
    %105 = vector.shape_cast %100 : vector<8x128xf32> to vector<1x8x128xf32>
    tpu.vector_store %arg4[%102, %c0_66, %c0_67], %105 {strides = array<i32>} : memref<8x8x128xf32, #tpu.memory_space<vmem>>, vector<1x8x128xf32>,
    %c6_i32 = arith.constant 6 : i32
    %c0_68 = arith.constant 0 : index
    %c0_69 = arith.constant 0 : index
    %106 = vector.load %arg5[%c0_68, %c0_69] : memref<8x128xf32, #tpu.memory_space<vmem>>, vector<8x128xf32>
    %cst_70 = arith.constant dense<0.000000e+00> : vector<8x128xf32>
    %107 = tpu.matmul %106, %3, %cst_70 {dimension_numbers = #tpu.dot_dimension_numbers<[1], [0], [0], [1], [0, 0, 1, 1], [], []>} : vector<8x128xf32>, vector<128x128xf32>, vector<8x128xf32> -> vector<8x128xf32>
    %108 = arith.index_cast %c6_i32 : i32 to index
    %c0_71 = arith.constant 0 : index
    %c0_72 = arith.constant 0 : index
    %109 = vector.load %arg1[%108, %c0_71, %c0_72] : memref<8x8x128xf32, #tpu.memory_space<vmem>>, vector<1x8x128xf32>
    %110 = vector.shape_cast %109 : vector<1x8x128xf32> to vector<8x128xf32>
    %111 = arith.addf %107, %110 : vector<8x128xf32>
    %cst_73 = arith.constant 0.899999976 : f32
    %112 = vector.broadcast %cst_73 : f32 to vector<8x128xf32>
    %113 = arith.mulf %112, %106 : vector<8x128xf32>
    %114 = math.tanh %111 : vector<8x128xf32>
    %cst_74 = arith.constant 1.000000e-01 : f32
    %115 = vector.broadcast %cst_74 : f32 to vector<8x128xf32>
    %116 = arith.mulf %115, %114 : vector<8x128xf32>
    %117 = arith.addf %113, %116 : vector<8x128xf32>
    %c0_75 = arith.constant 0 : index
    %c0_76 = arith.constant 0 : index
    %118 = vector.load %arg5[%c0_75, %c0_76] : memref<8x128xf32, #tpu.memory_space<vmem>>, vector<8x128xf32>
    tpu.vector_store %arg5[%c0_75, %c0_76], %117 {strides = array<i32>} : memref<8x128xf32, #tpu.memory_space<vmem>>, vector<8x128xf32>,
    %119 = arith.index_cast %c6_i32 : i32 to index
    %c0_77 = arith.constant 0 : index
    %c0_78 = arith.constant 0 : index
    %120 = vector.load %arg4[%119, %c0_77, %c0_78] : memref<8x8x128xf32, #tpu.memory_space<vmem>>, vector<1x8x128xf32>
    %121 = vector.shape_cast %120 : vector<1x8x128xf32> to vector<8x128xf32>
    %122 = vector.shape_cast %117 : vector<8x128xf32> to vector<1x8x128xf32>
    tpu.vector_store %arg4[%119, %c0_77, %c0_78], %122 {strides = array<i32>} : memref<8x8x128xf32, #tpu.memory_space<vmem>>, vector<1x8x128xf32>,
    %c7_i32 = arith.constant 7 : i32
    %c0_79 = arith.constant 0 : index
    %c0_80 = arith.constant 0 : index
    %123 = vector.load %arg5[%c0_79, %c0_80] : memref<8x128xf32, #tpu.memory_space<vmem>>, vector<8x128xf32>
    %cst_81 = arith.constant dense<0.000000e+00> : vector<8x128xf32>
    %124 = tpu.matmul %123, %3, %cst_81 {dimension_numbers = #tpu.dot_dimension_numbers<[1], [0], [0], [1], [0, 0, 1, 1], [], []>} : vector<8x128xf32>, vector<128x128xf32>, vector<8x128xf32> -> vector<8x128xf32>
    %125 = arith.index_cast %c7_i32 : i32 to index
    %c0_82 = arith.constant 0 : index
    %c0_83 = arith.constant 0 : index
    %126 = vector.load %arg1[%125, %c0_82, %c0_83] : memref<8x8x128xf32, #tpu.memory_space<vmem>>, vector<1x8x128xf32>
    %127 = vector.shape_cast %126 : vector<1x8x128xf32> to vector<8x128xf32>
    %128 = arith.addf %124, %127 : vector<8x128xf32>
    %cst_84 = arith.constant 0.899999976 : f32
    %129 = vector.broadcast %cst_84 : f32 to vector<8x128xf32>
    %130 = arith.mulf %129, %123 : vector<8x128xf32>
    %131 = math.tanh %128 : vector<8x128xf32>
    %cst_85 = arith.constant 1.000000e-01 : f32
    %132 = vector.broadcast %cst_85 : f32 to vector<8x128xf32>
    %133 = arith.mulf %132, %131 : vector<8x128xf32>
    %134 = arith.addf %130, %133 : vector<8x128xf32>
    %c0_86 = arith.constant 0 : index
    %c0_87 = arith.constant 0 : index
    %135 = vector.load %arg5[%c0_86, %c0_87] : memref<8x128xf32, #tpu.memory_space<vmem>>, vector<8x128xf32>
    tpu.vector_store %arg5[%c0_86, %c0_87], %134 {strides = array<i32>} : memref<8x128xf32, #tpu.memory_space<vmem>>, vector<8x128xf32>,
    %136 = arith.index_cast %c7_i32 : i32 to index
    %c0_88 = arith.constant 0 : index
    %c0_89 = arith.constant 0 : index
    %137 = vector.load %arg4[%136, %c0_88, %c0_89] : memref<8x8x128xf32, #tpu.memory_space<vmem>>, vector<1x8x128xf32>
    %138 = vector.shape_cast %137 : vector<1x8x128xf32> to vector<8x128xf32>
    %139 = vector.shape_cast %134 : vector<8x128xf32> to vector<1x8x128xf32>
    tpu.vector_store %arg4[%136, %c0_88, %c0_89], %139 {strides = array<i32>} : memref<8x8x128xf32, #tpu.memory_space<vmem>>, vector<1x8x128xf32>,
    %c8_i32 = arith.constant 8 : i32
    return
  }
  func.func @transform_0(%arg0: i32) -> (i32, i32, i32) {
    %c0_i32 = arith.constant 0 : i32
    %c0_i32_0 = arith.constant 0 : i32
    %c0_i32_1 = arith.constant 0 : i32
    return %arg0, %c0_i32, %c0_i32_0 : i32, i32, i32
  }
  func.func @transform_1(%arg0: i32) -> (i32, i32) {
    %c0_i32 = arith.constant 0 : i32
    %c0_i32_0 = arith.constant 0 : i32
    %c0_i32_1 = arith.constant 0 : i32
    return %c0_i32, %c0_i32_0 : i32, i32
  }
  func.func @transform_2(%arg0: i32) -> (i32, i32) {
    %c0_i32 = arith.constant 0 : i32
    %c0_i32_0 = arith.constant 0 : i32
    %c0_i32_1 = arith.constant 0 : i32
    return %c0_i32, %c0_i32_0 : i32, i32
  }
  func.func @transform_3(%arg0: i32) -> (i32, i32, i32) {
    %c0_i32 = arith.constant 0 : i32
    %c0_i32_0 = arith.constant 0 : i32
    %c0_i32_1 = arith.constant 0 : i32
    return %arg0, %c0_i32, %c0_i32_0 : i32, i32, i32
  }
}

</mosaic_0001>

<bundles_post_ra>
// kernel: tpu_custom_call.1
= control target key start
LH: loop header
LB: loop body
LE: loop exit
PB: predicated region body
PF: predicated region fallthrough
CT: control target
= control target key end

     0   :  { %8 = vsyncpa [#allocation4], 0  ;;  %s1712_s0 = inlined_call_operand.hbm [shape: f32[8,8,128], index: 0, kind: input, shape index: {}]   ;;  %s1713_s1 = inlined_call_operand.hbm [shape: f32[8,128], index: 1, kind: input, shape index: {}]   ;;  %s1714_s2 = inlined_call_operand.hbm [shape: f32[128,128], index: 2, kind: input, shape index: {}]   ;;  %s1715_s3 = inlined_call_operand.hbm [shape: f32[8,8,128], index: 3, kind: output, shape index: {}]  }
   0x1   :  { %9 = vsyncpa [#allocation7], 0 }
   0x2   :  { %10 = vsyncpa [#allocation5], 0  ;;  %s1459_s12 = smov [#allocation6]   ;;  %s1460_s14 = smov [#allocation3]  }
   0x3   :  { %s29_s13 = sshll.u32 %s1459_s12, 4  ;;  %s16_s15 = sshll.u32 %s1460_s14, 4  ;;  %s30_s13 = int_to_ptr.vmem [resolvable:$true] %s29_s13  ;;  %s1488_s15 = int_to_ptr.vmem [resolvable:$true] %s16_s15 }
   0x4   :  { %s1365_s18 = scalar_lea.hbm %s1713_s1, 128 }
   0x5   :  { %p1366_p0 = scmp.ne.s32.totalorder %s1713_s1, %s1365_s18  ;;  %p1369_p1 = scmp.lt.u32.totalorder %s1365_s18, %s1713_s1 }
   0x7   :  { %p1371_p2 = pnand %p1369_p1, %p1366_p0 }
   0x9   :  { %1374 = shalt.err (!%p1371_p2)
}
   0xa   :  { %s1375_s23 = scalar_lea.vmem %s30_s13, 128  ;;  %p1380_p4 = scmp.lt.s32.totalorder %s30_s13, %s30_s13 }
   0xb   :  { %p1376_p3 = scmp.ne.s32.totalorder %s30_s13, %s1375_s23  ;;  %p1381_p5 = scmp.lt.s32.totalorder %s1375_s23, %s1375_s23 }
   0xd   :  { %p1382_p6 = por %p1381_p5, %p1380_p4 }
   0xf   :  { %p1383_p7 = pnand %p1382_p6, %p1376_p3 }
  0x11   :  { %1386 = shalt.err (!%p1383_p7)
}
  0x12   :  { %32 = dma.hbm_to_vmem [thread:$0]  %s1713_s1, 128, %s30_s13, [#allocation7]  }
  0x13   :  { %s1387_s28 = scalar_lea.hbm %s1712_s0, 1024 }
  0x14   :  { %p1388_p8 = scmp.ne.s32.totalorder %s1712_s0, %s1387_s28  ;;  %p1391_p9 = scmp.lt.u32.totalorder %s1387_s28, %s1712_s0 }
  0x16   :  { %p1393_p10 = pnand %p1391_p9, %p1388_p8 }
  0x18   :  { %1396 = shalt.err (!%p1393_p10)
}
  0x19   :  { %s1397_s6 = scalar_lea.vmem %s1488_s15, 1024  ;;  %p1402_p12 = scmp.lt.s32.totalorder %s1488_s15, %s1488_s15 }
  0x1a   :  { %p1398_p11 = scmp.ne.s32.totalorder %s1488_s15, %s1397_s6  ;;  %p1403_p13 = scmp.lt.s32.totalorder %s1397_s6, %s1397_s6 }
  0x1c   :  { %p1404_p0 = por %p1403_p13, %p1402_p12 }
  0x1e   :  { %p1405_p1 = pnand %p1404_p0, %p1398_p11 }
  0x20   :  { %1408 = shalt.err (!%p1405_p1)
}
  0x21   :  { %s1461_s1 = smov 128   ;;  %s1462_s7 = smov 8  }
  0x22   :  { %22 = dma.hbm_to_vmem [thread:$0]  %s1712_s0, 1024, %s1488_s15, [#allocation4], %s1461_s1, %s1461_s1, %s1462_s7  }
  0x23   :  { %s1463_s10 = smov [#allocation8]   ;;  %s1409_s14 = scalar_lea.hbm %s1714_s2, 2048 }
  0x24   :  { %s38_s11 = sshll.u32 %s1463_s10, 4  ;;  %p1410_p2 = scmp.ne.s32.totalorder %s1714_s2, %s1409_s14  ;;  %s39_s11 = int_to_ptr.vmem [resolvable:$true] %s38_s11 }
  0x25   :  { %p1413_p3 = scmp.lt.u32.totalorder %s1409_s14, %s1714_s2 }
  0x27   :  { %p1415_p4 = pnand %p1413_p3, %p1410_p2 }
  0x29   :  { %1418 = shalt.err (!%p1415_p4)
}
  0x2a   :  { %s1419_s20 = scalar_lea.vmem %s39_s11, 2048  ;;  %p1424_p6 = scmp.lt.s32.totalorder %s39_s11, %s39_s11 }
  0x2b   :  { %p1420_p5 = scmp.ne.s32.totalorder %s39_s11, %s1419_s20  ;;  %p1425_p7 = scmp.lt.s32.totalorder %s1419_s20, %s1419_s20 }
  0x2d   :  { %p1426_p8 = por %p1425_p7, %p1424_p6 }
  0x2f   :  { %p1427_p9 = pnand %p1426_p8, %p1420_p5 }
  0x31   :  { %1430 = shalt.err (!%p1427_p9)
}
  0x32   :  { %44 = dma.hbm_to_vmem [thread:$0]  %s1714_s2, 2048, %s39_s11, [#allocation7], %s1461_s1, %s1461_s1, %s1462_s7  }
  0x33   :  { %1453 = dma.done.wait [#allocation4], 1024  }
  0x34   :  { %1454 = vsyncadd [#allocation4], 4294966272 }
  0x35   :  { %1455 = dma.done.wait [#allocation7], 2176  }
  0x36   :  { %1456 = vsyncadd [#allocation7], 4294965120  ;;  %v1464_v0 = vmov 0.0|0.0   ;;  %vm1465_vm0 = vmmov 0   ;;  %v1466_v1 = vmov 0.0   ;;  %v60_v2 = vld [vmem:[#allocation8] sm:$0xff] }
  0x37   :  { %1148 = vmatprep.subr.bf16.mxu0 %v1464_v0  ;;  %900 = vmatprep.mubr.msk.f32.mxu0 %vm1465_vm0, %v1466_v1  ;;  %v61_v3 = vld [vmem:[#allocation8 + $0x8] sm:$0xff]  ;;  %v62_v4 = vld [vmem:[#allocation8 + $0x10] sm:$0xff]  ;;  %v63_v6 = vld [vmem:[#allocation8 + $0x18] sm:$0xff]  ;;  %s1467_s2 = smov [#allocation9]  }
  0x38   :  { %1172 = vmatprep.subr.bf16.mxu1 %v1464_v0  ;;  %935 = vmatprep.mubr.msk.f32.mxu1 %vm1465_vm0, %v1466_v1  ;;  %v1543_v5 = vpack.c.bf16 %v61_v3, %v60_v2  ;;  %v1546_v7 = vpack.c.bf16 %v63_v6, %v62_v4  ;;  %v64_v8 = vld [vmem:[#allocation8 + $0x20] sm:$0xff]  ;;  %v65_v9 = vld [vmem:[#allocation8 + $0x28] sm:$0xff]  ;;  %v66_v11 = vld [vmem:[#allocation8 + $0x30] sm:$0xff]  ;;  %s719_s21 = sshll.u32 %s1467_s2, 4  ;;  %s720_s21 = int_to_ptr.vmem [resolvable:$true] %s719_s21 }
  0x39   :  { %v1552_v10 = vpack.c.bf16 %v65_v9, %v64_v8  ;;  %v67_v12 = vld [vmem:[#allocation8 + $0x38] sm:$0xff]  ;;  %v68_v14 = vld [vmem:[#allocation8 + $0x40] sm:$0xff]  ;;  %v69_v15 = vld [vmem:[#allocation8 + $0x48] sm:$0xff]  ;;  %s1431_s22 = scalar_lea.vmem %s720_s21, 1024  ;;  %p1436_p11 = scmp.lt.s32.totalorder %s720_s21, %s720_s21 }
  0x3a   :  { %1150 = vmatpush3.bf16.msra.mxu0 %v1543_v5  ;;  %1174 = vmatpush3.bf16.msra.mxu1 %v1543_v5  ;;  %v1558_v13 = vpack.c.bf16 %v67_v12, %v66_v11  ;;  %v1564_v16 = vpack.c.bf16 %v69_v15, %v68_v14  ;;  %v70_v17 = vld [vmem:[#allocation8 + $0x50] sm:$0xff]  ;;  %v71_v18 = vld [vmem:[#allocation8 + $0x58] sm:$0xff]  ;;  %v72_v20 = vld [vmem:[#allocation8 + $0x60] sm:$0xff]  ;;  %p1432_p10 = scmp.ne.s32.totalorder %s720_s21, %s1431_s22  ;;  %p1437_p12 = scmp.lt.s32.totalorder %s1431_s22, %s1431_s22 }
  0x3b   :  { %1151 = vmatprep.subr.bf16.mxu0 %v1464_v0  ;;  %1175 = vmatprep.subr.bf16.mxu1 %v1464_v0  ;;  %v1570_v19 = vpack.c.bf16 %v71_v18, %v70_v17  ;;  %v73_v21 = vld [vmem:[#allocation8 + $0x68] sm:$0xff]  ;;  %v74_v23 = vld [vmem:[#allocation8 + $0x70] sm:$0xff]  ;;  %v75_v24 = vld [vmem:[#allocation8 + $0x78] sm:$0xff] }
  0x3c   :  { %v1576_v22 = vpack.c.bf16 %v73_v21, %v72_v20  ;;  %v1582_v25 = vpack.c.bf16 %v75_v24, %v74_v23  ;;  %v58_v26 = vld [vmem:[#allocation6] sm:$0xff]  ;;  %v156_v35 = vld [vmem:[#allocation3 + $0x8] sm:$0xff]  ;;  %v236_v43 = vld [vmem:[#allocation3 + $0x10] sm:$0xff]  ;;  %p1438_p13 = por %p1437_p12, %p1436_p11 }
  0x3d   :  { %v77_v27 = vld [vmem:[#allocation3] sm:$0xff]  ;;  %v148_v31 = vmul.f32 0.9, %v58_v26  ;;  %v316_v51 = vld [vmem:[#allocation3 + $0x18] sm:$0xff]  ;;  %v556_v12 = vld [vmem:[#allocation3 + $0x30] sm:$0xff] }
  0x3e   :  { %1153 = vmatpush3.bf16.msra.mxu0 %v1546_v7  ;;  %1177 = vmatpush3.bf16.msra.mxu1 %v1546_v7  ;;  %v396_v59 = vld [vmem:[#allocation3 + $0x20] sm:$0xff]  ;;  %p1439_p0 = pnand %p1438_p13, %p1432_p10 }
  0x3f   :  { %1154 = vmatprep.subr.bf16.mxu0 %v1464_v0  ;;  %1178 = vmatprep.subr.bf16.mxu1 %v1464_v0 }
  0x42   :  { %1156 = vmatpush3.bf16.msra.mxu0 %v1552_v10  ;;  %1180 = vmatpush3.bf16.msra.mxu1 %v1552_v10 }
  0x43   :  { %1157 = vmatprep.subr.bf16.mxu0 %v1464_v0  ;;  %1181 = vmatprep.subr.bf16.mxu1 %v1464_v0 }
  0x46   :  { %1159 = vmatpush3.bf16.msra.mxu0 %v1558_v13  ;;  %1183 = vmatpush3.bf16.msra.mxu1 %v1558_v13 }
  0x47   :  { %1160 = vmatprep.subr.bf16.mxu0 %v1464_v0  ;;  %1184 = vmatprep.subr.bf16.mxu1 %v1464_v0 }
  0x4a   :  { %1162 = vmatpush3.bf16.msra.mxu0 %v1564_v16  ;;  %1186 = vmatpush3.bf16.msra.mxu1 %v1564_v16 }
  0x4b   :  { %1163 = vmatprep.subr.bf16.mxu0 %v1464_v0  ;;  %1187 = vmatprep.subr.bf16.mxu1 %v1464_v0 }
  0x4e   :  { %1165 = vmatpush3.bf16.msra.mxu0 %v1570_v19  ;;  %1189 = vmatpush3.bf16.msra.mxu1 %v1570_v19 }
  0x4f   :  { %1166 = vmatprep.subr.bf16.mxu0 %v1464_v0  ;;  %1190 = vmatprep.subr.bf16.mxu1 %v1464_v0 }
  0x52   :  { %1168 = vmatpush3.bf16.msra.mxu0 %v1576_v22  ;;  %1192 = vmatpush3.bf16.msra.mxu1 %v1576_v22 }
  0x53   :  { %1169 = vmatprep.subr.bf16.mxu0 %v1464_v0  ;;  %1193 = vmatprep.subr.bf16.mxu1 %v1464_v0 }
  0x56   :  { %1171 = vmatpush3.bf16.msra.mxu0 %v1582_v25  ;;  %1195 = vmatpush3.bf16.msra.mxu1 %v1582_v25 }
  0x57   :  { %1196 = vmatprep.subr.bf16.mxu0 %v1464_v0  ;;  %1220 = vmatprep.subr.bf16.mxu1 %v1464_v0 }
  0x59   :  { %901 = vmatmul.mubr.f32.vlgmr.msra.gmra.mrb[0].mxu0 %v58_v26 }
  0x5a   :  { %1198 = vmatpush3.bf16.msra.mxu0 %v1543_v5  ;;  %970 = vmatprep.mubr.msk.f32.mxu0 %vm1465_vm0, %v1466_v1 }
  0x5b   :  { %1199 = vmatprep.subr.bf16.mxu0 %v1464_v0 }
  0x5e   :  { %1201 = vmatpush3.bf16.msra.mxu0 %v1546_v7 }
  0x5f   :  { %1202 = vmatprep.subr.bf16.mxu0 %v1464_v0 }
  0x62   :  { %1204 = vmatpush3.bf16.msra.mxu0 %v1552_v10 }
  0x63   :  { %1205 = vmatprep.subr.bf16.mxu0 %v1464_v0 }
  0x66   :  { %1207 = vmatpush3.bf16.msra.mxu0 %v1558_v13 }
  0x67   :  { %1208 = vmatprep.subr.bf16.mxu0 %v1464_v0 }
  0x6a   :  { %1210 = vmatpush3.bf16.msra.mxu0 %v1564_v16 }
  0x6b   :  { %1211 = vmatprep.subr.bf16.mxu0 %v1464_v0 }
  0x6e   :  { %1213 = vmatpush3.bf16.msra.mxu0 %v1570_v19 }
  0x6f   :  { %1214 = vmatprep.subr.bf16.mxu0 %v1464_v0 }
  0x72   :  { %1216 = vmatpush3.bf16.msra.mxu0 %v1576_v22 }
  0x73   :  { %1217 = vmatprep.subr.bf16.mxu0 %v1464_v0 }
  0x76   :  { %1219 = vmatpush3.bf16.msra.mxu0 %v1582_v25 }
  0x77   :  { %1244 = vmatprep.subr.bf16.mxu0 %v1464_v0 }
 0x12c   :  { %v144_v28 = vpop.f32.mrb[0].mxu0 }
 0x12d   :  { %v145_v29 = vadd.f32 %v144_v28, %v77_v27  ;;  %v902_v30 = vpop.f32.mrb[1].mxu0 }
 0x12f   :  { %1349 = vtanh.f32 %v145_v29 }
 0x139   :  { %v1350_v32 = vpop.eup %1349 }
 0x13a   :  { %v150_v33 = vmul.f32 0.1, %v1350_v32 }
 0x13c   :  { %v151_v34 = vadd.f32 %v150_v33, %v148_v31 }
 0x13e   :  { %153 = vst [vmem:[#allocation9] sm:$0xff] %v151_v34  ;;  %936 = vmatmul.mubr.f32.vlgmr.msra.gmra.mrb[0].mxu1 %v151_v34  ;;  %v227_v40 = vmul.f32 0.9, %v151_v34 }
 0x13f   :  { %1222 = vmatpush3.bf16.msra.mxu1 %v1543_v5  ;;  %1005 = vmatprep.mubr.msk.f32.mxu1 %vm1465_vm0, %v1466_v1 }
 0x140   :  { %1223 = vmatprep.subr.bf16.mxu1 %v1464_v0 }
 0x143   :  { %1225 = vmatpush3.bf16.msra.mxu1 %v1546_v7 }
 0x144   :  { %1226 = vmatprep.subr.bf16.mxu1 %v1464_v0 }
 0x147   :  { %1228 = vmatpush3.bf16.msra.mxu1 %v1552_v10 }
 0x148   :  { %1229 = vmatprep.subr.bf16.mxu1 %v1464_v0 }
 0x14b   :  { %1231 = vmatpush3.bf16.msra.mxu1 %v1558_v13 }
 0x14c   :  { %1232 = vmatprep.subr.bf16.mxu1 %v1464_v0 }
 0x14f   :  { %1234 = vmatpush3.bf16.msra.mxu1 %v1564_v16 }
 0x150   :  { %1235 = vmatprep.subr.bf16.mxu1 %v1464_v0 }
 0x153   :  { %1237 = vmatpush3.bf16.msra.mxu1 %v1570_v19 }
 0x154   :  { %1238 = vmatprep.subr.bf16.mxu1 %v1464_v0 }
 0x157   :  { %1240 = vmatpush3.bf16.msra.mxu1 %v1576_v22 }
 0x158   :  { %1241 = vmatprep.subr.bf16.mxu1 %v1464_v0 }
 0x15b   :  { %1243 = vmatpush3.bf16.msra.mxu1 %v1582_v25 }
 0x15c   :  { %1268 = vmatprep.subr.bf16.mxu1 %v1464_v0 }
 0x211   :  { %v223_v36 = vpop.f32.mrb[0].mxu1 }
 0x212   :  { %v224_v37 = vadd.f32 %v223_v36, %v156_v35  ;;  %v937_v38 = vpop.f32.mrb[1].mxu1 }
 0x214   :  { %1351 = vtanh.f32 %v224_v37 }
 0x21e   :  { %v1352_v39 = vpop.eup %1351 }
 0x21f   :  { %v229_v41 = vmul.f32 0.1, %v1352_v39 }
 0x221   :  { %v230_v42 = vadd.f32 %v229_v41, %v227_v40 }
 0x223   :  { %233 = vst [vmem:[#allocation9 + $0x8] sm:$0xff] %v230_v42  ;;  %971 = vmatmul.mubr.f32.vlgmr.msra.gmra.mrb[2].mxu0 %v230_v42  ;;  %v307_v48 = vmul.f32 0.9, %v230_v42 }
 0x224   :  { %1246 = vmatpush3.bf16.msra.mxu0 %v1543_v5  ;;  %1040 = vmatprep.mubr.msk.f32.mxu0 %vm1465_vm0, %v1466_v1 }
 0x225   :  { %1247 = vmatprep.subr.bf16.mxu0 %v1464_v0 }
 0x228   :  { %1249 = vmatpush3.bf16.msra.mxu0 %v1546_v7 }
 0x229   :  { %1250 = vmatprep.subr.bf16.mxu0 %v1464_v0 }
 0x22c   :  { %1252 = vmatpush3.bf16.msra.mxu0 %v1552_v10 }
 0x22d   :  { %1253 = vmatprep.subr.bf16.mxu0 %v1464_v0 }
 0x230   :  { %1255 = vmatpush3.bf16.msra.mxu0 %v1558_v13 }
 0x231   :  { %1256 = vmatprep.subr.bf16.mxu0 %v1464_v0 }
 0x234   :  { %1258 = vmatpush3.bf16.msra.mxu0 %v1564_v16 }
 0x235   :  { %1259 = vmatprep.subr.bf16.mxu0 %v1464_v0 }
 0x238   :  { %1261 = vmatpush3.bf16.msra.mxu0 %v1570_v19 }
 0x239   :  { %1262 = vmatprep.subr.bf16.mxu0 %v1464_v0 }
 0x23c   :  { %1264 = vmatpush3.bf16.msra.mxu0 %v1576_v22 }
 0x23d   :  { %1265 = vmatprep.subr.bf16.mxu0 %v1464_v0 }
 0x240   :  { %1267 = vmatpush3.bf16.msra.mxu0 %v1582_v25 }
 0x241   :  { %1292 = vmatprep.subr.bf16.mxu0 %v1464_v0 }
 0x2f6   :  { %v303_v44 = vpop.f32.mrb[2].mxu0 }
 0x2f7   :  { %v304_v45 = vadd.f32 %v303_v44, %v236_v43  ;;  %v972_v46 = vpop.f32.mrb[3].mxu0 }
 0x2f9   :  { %1353 = vtanh.f32 %v304_v45 }
 0x303   :  { %v1354_v47 = vpop.eup %1353 }
 0x304   :  { %v309_v49 = vmul.f32 0.1, %v1354_v47 }
 0x306   :  { %v310_v50 = vadd.f32 %v309_v49, %v307_v48 }
 0x308   :  { %313 = vst [vmem:[#allocation9 + $0x10] sm:$0xff] %v310_v50  ;;  %1006 = vmatmul.mubr.f32.vlgmr.msra.gmra.mrb[2].mxu1 %v310_v50  ;;  %v387_v56 = vmul.f32 0.9, %v310_v50 }
 0x309   :  { %1270 = vmatpush3.bf16.msra.mxu1 %v1543_v5  ;;  %1075 = vmatprep.mubr.msk.f32.mxu1 %vm1465_vm0, %v1466_v1 }
 0x30a   :  { %1271 = vmatprep.subr.bf16.mxu1 %v1464_v0 }
 0x30d   :  { %1273 = vmatpush3.bf16.msra.mxu1 %v1546_v7 }
 0x30e   :  { %1274 = vmatprep.subr.bf16.mxu1 %v1464_v0 }
 0x311   :  { %1276 = vmatpush3.bf16.msra.mxu1 %v1552_v10 }
 0x312   :  { %1277 = vmatprep.subr.bf16.mxu1 %v1464_v0 }
 0x315   :  { %1279 = vmatpush3.bf16.msra.mxu1 %v1558_v13 }
 0x316   :  { %1280 = vmatprep.subr.bf16.mxu1 %v1464_v0 }
 0x319   :  { %1282 = vmatpush3.bf16.msra.mxu1 %v1564_v16 }
 0x31a   :  { %1283 = vmatprep.subr.bf16.mxu1 %v1464_v0 }
 0x31d   :  { %1285 = vmatpush3.bf16.msra.mxu1 %v1570_v19 }
 0x31e   :  { %1286 = vmatprep.subr.bf16.mxu1 %v1464_v0 }
 0x321   :  { %1288 = vmatpush3.bf16.msra.mxu1 %v1576_v22 }
 0x322   :  { %1289 = vmatprep.subr.bf16.mxu1 %v1464_v0 }
 0x325   :  { %1291 = vmatpush3.bf16.msra.mxu1 %v1582_v25 }
 0x326   :  { %1316 = vmatprep.subr.bf16.mxu1 %v1464_v0 }
 0x3db   :  { %v383_v52 = vpop.f32.mrb[2].mxu1 }
 0x3dc   :  { %v384_v53 = vadd.f32 %v383_v52, %v316_v51  ;;  %v1007_v54 = vpop.f32.mrb[3].mxu1 }
 0x3de   :  { %1355 = vtanh.f32 %v384_v53 }
 0x3e8   :  { %v1356_v55 = vpop.eup %1355 }
 0x3e9   :  { %v389_v57 = vmul.f32 0.1, %v1356_v55 }
 0x3eb   :  { %v390_v58 = vadd.f32 %v389_v57, %v387_v56 }
 0x3ed   :  { %393 = vst [vmem:[#allocation9 + $0x18] sm:$0xff] %v390_v58  ;;  %1041 = vmatmul.mubr.f32.vlgmr.msra.gmra.mrb[4].mxu0 %v390_v58  ;;  %v467_v2 = vmul.f32 0.9, %v390_v58 }
 0x3ee   :  { %1294 = vmatpush3.bf16.msra.mxu0 %v1543_v5  ;;  %1110 = vmatprep.mubr.msk.f32.mxu0 %vm1465_vm0, %v1466_v1 }
 0x3ef   :  { %1295 = vmatprep.subr.bf16.mxu0 %v1464_v0 }
 0x3f2   :  { %1297 = vmatpush3.bf16.msra.mxu0 %v1546_v7 }
 0x3f3   :  { %1298 = vmatprep.subr.bf16.mxu0 %v1464_v0 }
 0x3f6   :  { %1300 = vmatpush3.bf16.msra.mxu0 %v1552_v10 }
 0x3f7   :  { %1301 = vmatprep.subr.bf16.mxu0 %v1464_v0 }
 0x3fa   :  { %1303 = vmatpush3.bf16.msra.mxu0 %v1558_v13 }
 0x3fb   :  { %1304 = vmatprep.subr.bf16.mxu0 %v1464_v0 }
 0x3fe   :  { %1306 = vmatpush3.bf16.msra.mxu0 %v1564_v16 }
 0x3ff   :  { %1307 = vmatprep.subr.bf16.mxu0 %v1464_v0 }
 0x402   :  { %1309 = vmatpush3.bf16.msra.mxu0 %v1570_v19 }
 0x403   :  { %1310 = vmatprep.subr.bf16.mxu0 %v1464_v0 }
 0x406   :  { %1312 = vmatpush3.bf16.msra.mxu0 %v1576_v22 }
 0x407   :  { %1313 = vmatprep.subr.bf16.mxu0 %v1464_v0 }
 0x40a   :  { %1315 = vmatpush3.bf16.msra.mxu0 %v1582_v25 }
 0x4c0   :  { %v463_v60 = vpop.f32.mrb[4].mxu0 }
 0x4c1   :  { %v464_v61 = vadd.f32 %v463_v60, %v396_v59  ;;  %v1042_v62 = vpop.f32.mrb[5].mxu0 }
 0x4c3   :  { %1357 = vtanh.f32 %v464_v61 }
 0x4cd   :  { %v1358_v63 = vpop.eup %1357 }
 0x4ce   :  { %v469_v3 = vmul.f32 0.1, %v1358_v63 }
 0x4d0   :  { %v470_v4 = vadd.f32 %v469_v3, %v467_v2 }
 0x4d2   :  { %473 = vst [vmem:[#allocation9 + $0x20] sm:$0xff] %v470_v4  ;;  %1076 = vmatmul.mubr.f32.vlgmr.msra.gmra.mrb[4].mxu1 %v470_v4  ;;  %v547_v9 = vmul.f32 0.9, %v470_v4 }
 0x4d3   :  { %1318 = vmatpush3.bf16.msra.mxu1 %v1543_v5  ;;  %1145 = vmatprep.mubr.msk.f32.mxu1 %vm1465_vm0, %v1466_v1  ;;  %v476_v1 = vld [vmem:[#allocation3 + $0x28] sm:$0xff] }
 0x4d4   :  { %1319 = vmatprep.subr.bf16.mxu1 %v1464_v0 }
 0x4d7   :  { %1321 = vmatpush3.bf16.msra.mxu1 %v1546_v7 }
 0x4d8   :  { %1322 = vmatprep.subr.bf16.mxu1 %v1464_v0 }
 0x4db   :  { %1324 = vmatpush3.bf16.msra.mxu1 %v1552_v10 }
 0x4dc   :  { %1325 = vmatprep.subr.bf16.mxu1 %v1464_v0 }
 0x4df   :  { %1327 = vmatpush3.bf16.msra.mxu1 %v1558_v13 }
 0x4e0   :  { %1328 = vmatprep.subr.bf16.mxu1 %v1464_v0 }
 0x4e3   :  { %1330 = vmatpush3.bf16.msra.mxu1 %v1564_v16 }
 0x4e4   :  { %1331 = vmatprep.subr.bf16.mxu1 %v1464_v0 }
 0x4e7   :  { %1333 = vmatpush3.bf16.msra.mxu1 %v1570_v19  ;;  %v636_v19 = vld [vmem:[#allocation3 + $0x38] sm:$0xff] }
 0x4e8   :  { %1334 = vmatprep.subr.bf16.mxu1 %v1464_v0 }
 0x4eb   :  { %1336 = vmatpush3.bf16.msra.mxu1 %v1576_v22 }
 0x4ec   :  { %1337 = vmatprep.subr.bf16.mxu1 %v1464_v0 }
 0x4ef   :  { %1339 = vmatpush3.bf16.msra.mxu1 %v1582_v25 }
 0x5a5   :  { %v543_v5 = vpop.f32.mrb[4].mxu1 }
 0x5a6   :  { %v544_v6 = vadd.f32 %v543_v5, %v476_v1  ;;  %v1077_v7 = vpop.f32.mrb[5].mxu1 }
 0x5a8   :  { %1359 = vtanh.f32 %v544_v6 }
 0x5b2   :  { %v1360_v8 = vpop.eup %1359 }
 0x5b3   :  { %v549_v10 = vmul.f32 0.1, %v1360_v8 }
 0x5b5   :  { %v550_v11 = vadd.f32 %v549_v10, %v547_v9 }
 0x5b7   :  { %553 = vst [vmem:[#allocation9 + $0x28] sm:$0xff] %v550_v11  ;;  %1111 = vmatmul.mubr.f32.vlgmr.msra.gmra.mrb[6].mxu0 %v550_v11  ;;  %v627_v0 = vmul.f32 0.9, %v550_v11 }
 0x68a   :  { %v623_v13 = vpop.f32.mrb[6].mxu0 }
 0x68b   :  { %v624_v14 = vadd.f32 %v623_v13, %v556_v12  ;;  %v1112_v15 = vpop.f32.mrb[7].mxu0 }
 0x68d   :  { %1361 = vtanh.f32 %v624_v14 }
 0x697   :  { %v1362_v16 = vpop.eup %1361 }
 0x698   :  { %v629_v17 = vmul.f32 0.1, %v1362_v16 }
 0x69a   :  { %v630_v18 = vadd.f32 %v629_v17, %v627_v0 }
 0x69c   :  { %633 = vst [vmem:[#allocation9 + $0x30] sm:$0xff] %v630_v18  ;;  %1146 = vmatmul.mubr.f32.vlgmr.msra.gmra.mrb[6].mxu1 %v630_v18  ;;  %v707_v24 = vmul.f32 0.9, %v630_v18 }
 0x76f   :  { %v703_v20 = vpop.f32.mrb[6].mxu1 }
 0x770   :  { %v704_v21 = vadd.f32 %v703_v20, %v636_v19  ;;  %v1147_v22 = vpop.f32.mrb[7].mxu1 }
 0x772   :  { %1363 = vtanh.f32 %v704_v21 }
 0x77c   :  { %v1364_v23 = vpop.eup %1363 }
 0x77d   :  { %v709_v25 = vmul.f32 0.1, %v1364_v23 }
 0x77f   :  { %v710_v26 = vadd.f32 %v709_v25, %v707_v24 }
 0x781   :  { %713 = vst [vmem:[#allocation9 + $0x38] sm:$0xff] %v710_v26 }
 0x782   :  { %1442 = shalt.err (!%p1439_p0)
}
 0x783   :  { %s1443_s25 = scalar_lea.hbm %s1715_s3, 1024 }
 0x784   :  { %p1444_p1 = scmp.ne.s32.totalorder %s1715_s3, %s1443_s25  ;;  %p1447_p2 = scmp.lt.u32.totalorder %s1443_s25, %s1715_s3 }
 0x786   :  { %p1449_p3 = pnand %p1447_p2, %p1444_p1 }
 0x788   :  { %1452 = shalt.err (!%p1449_p3)
}
 0x789   :  { %725 = dma.vmem_to_hbm [thread:$0]  %s720_s21, 1024, %s1715_s3, [#allocation5], %s1461_s1, %s1461_s1, %s1462_s7  }
 0x78a   :  { %1457 = dma.done.wait [#allocation5], 1024  }
 0x78b   :  { %1458 = vsyncadd [#allocation5], 4294966272 }
 0x78c   :  { %729 = vsyncpa [#allocation4], 1 }
 0x78d   :  { %730 = vsyncpa [#allocation7], 1 }
 0x78e   :  { %731 = vsyncpa [#allocation5], 1 }

</bundles_post_ra>
